<compile_context>
chip_gen: v7x
topology: tpu7x:2x2x1
jax: 0.10.0
libtpu: 0.0.40
codegen_flags: <defaults>
</compile_context>

<pallas_src>
import functools
import math

import jax
import jax.numpy as jnp
from jax.experimental import pallas as pl
from jax.experimental.pallas import tpu as pltpu


# ----------------------------------------------------------------------------
# Fused kernel: per-batch projections + scaled-dot-product attention + fc_out
# ----------------------------------------------------------------------------
def _fused_self_attention_kernel(v_ref, k_ref, q_ref, mask_ref,
                                 wv_ref, wk_ref, wq_ref, wo_ref, bo_ref,
                                 o_ref, *, heads, head_dim, scale):
    # Block shapes:
    #   v_ref/k_ref/q_ref : (1, L, E)       E = heads*head_dim (lane-dense)
    #   mask_ref          : (1, 1, Lq, Lk)  int32, NOT broadcast over heads
    #   wv/wk/wq_ref      : (E, E)          block-diagonal, pre-transposed
    #   wo_ref            : (E, E)          fc_out weight, pre-transposed
    #   bo_ref            : (1, E)
    #   o_ref             : (1, Lq, E)
    v2d = v_ref[0]                    # (v_len, E)
    k2d = k_ref[0]                    # (k_len, E)
    q2d = q_ref[0]                    # (q_len, E)
    mask = mask_ref[0, 0]             # (q_len, k_len) int32

    # Per-head nn.Linear projections fused into single lane-dense matmuls
    # (weights already transposed + block-diagonalized in the wrapper).
    v_p = jnp.dot(v2d, wv_ref[...], preferred_element_type=jnp.float32)
    k_p = jnp.dot(k2d, wk_ref[...], preferred_element_type=jnp.float32)
    q_p = jnp.dot(q2d, wq_ref[...], preferred_element_type=jnp.float32)

    q_len = q2d.shape[0]
    E = heads * head_dim

    # Accumulate the fused fc_out contribution per head (lane-dense E-wide
    # accumulator, single E-wide store at the end). Static unroll over heads.
    acc = jnp.zeros((q_len, E), jnp.float32)
    for h in range(heads):
        lo = h * head_dim
        hi = lo + head_dim
        q_h = q_p[:, lo:hi]           # (q_len, D)
        k_h = k_p[:, lo:hi]           # (k_len, D)
        v_h = v_p[:, lo:hi]           # (v_len, D)

        # energy = q_h @ k_h.T expressed via dot_general (no in-kernel .T)
        e_h = jax.lax.dot_general(q_h, k_h, (((1,), (1,)), ((), ())),
                                  preferred_element_type=jnp.float32)
        # masked_fill(mask == 0, -1e20), then scale by 1/sqrt(embed_size)
        e_h = jnp.where(mask == 0, jnp.float32(-1e20), e_h)
        s_h = e_h * scale

        # softmax along key dim; normalization via approximate reciprocal (EUP)
        m = jnp.max(s_h, axis=-1, keepdims=True)
        p = jnp.exp(s_h - m)
        denom = jnp.sum(p, axis=-1, keepdims=True)
        attn = p * pl.reciprocal(denom, approx=True)

        ctx_h = jnp.dot(attn, v_h, preferred_element_type=jnp.float32)  # (q, D)
        # fc_out contribution of this head: ctx_h @ Wo.T[:, head slice]
        acc = acc + jnp.dot(ctx_h, wo_ref[lo:hi, :],
                            preferred_element_type=jnp.float32)

    o_ref[0] = acc + bo_ref[...]


# ----------------------------------------------------------------------------
# Wrapper: one-time weight plumbing, BlockSpecs, single pallas_call
# ----------------------------------------------------------------------------
def self_attention_forward(values, keys, query, mask, params,
                           embed_size, heads):
    """values/keys/query: (N, seq_len, embed_size); mask broadcastable to
    (N, 1, query_len, key_len). Returns (N, query_len, embed_size)."""
    head_dim = embed_size // heads
    E = heads * head_dim
    N = query.shape[0]
    v_len, k_len, q_len = values.shape[1], keys.shape[1], query.shape[1]

    # One-time weight plumbing (amortized; no per-call activation transposes).
    eye = jnp.eye(heads, dtype=jnp.float32)
    wv_bd = jnp.kron(eye, params["Wv"].T)      # (E, E) block-diag of Wv.T
    wk_bd = jnp.kron(eye, params["Wk"].T)      # (E, E)
    wq_bd = jnp.kron(eye, params["Wq"].T)      # (E, E)
    wo_t = params["Wo"].T                      # (H*D, E)
    bo = params["bo"].reshape(1, embed_size)   # (1, E)

    # Keep mask un-broadcast over heads; integer dtype (not f32).
    mask_i = jnp.broadcast_to(mask, (N, 1, q_len, k_len)).astype(jnp.int32)

    kernel = functools.partial(
        _fused_self_attention_kernel,
        heads=heads, head_dim=head_dim,
        scale=1.0 / math.sqrt(embed_size))

    def act_spec(L):
        return pl.BlockSpec((1, L, E), lambda n: (n, 0, 0))

    def full_spec(shape):
        return pl.BlockSpec(shape, lambda n, _s=len(shape): (0,) * _s)

    out = pl.pallas_call(
        kernel,
        out_shape=jax.ShapeDtypeStruct((N, q_len, embed_size), jnp.float32),
        grid=(N,),
        in_specs=[
            act_spec(v_len),                                   # values
            act_spec(k_len),                                   # keys
            act_spec(q_len),                                   # query
            pl.BlockSpec((1, 1, q_len, k_len),
                         lambda n: (n, 0, 0, 0)),              # mask
            full_spec((E, E)),                                 # Wv block-diag
            full_spec((E, E)),                                 # Wk block-diag
            full_spec((E, E)),                                 # Wq block-diag
            full_spec((E, embed_size)),                        # Wo.T
            full_spec((1, embed_size)),                        # bias
        ],
        out_specs=pl.BlockSpec((1, q_len, embed_size), lambda n: (n, 0, 0)),
        compiler_params=pltpu.CompilerParams(
            dimension_semantics=("parallel",)),
    )(values, keys, query, mask_i, wv_bd, wk_bd, wq_bd, wo_t, bo)

    return out


# ----------------------------------------------------------------------------
# Pure-JAX reference for correctness check
# ----------------------------------------------------------------------------
def self_attention_ref(values, keys, query, mask, params, embed_size, heads):
    head_dim = embed_size // heads
    N = query.shape[0]
    v_len, k_len, q_len = values.shape[1], keys.shape[1], query.shape[1]
    v = values.reshape(N, v_len, heads, head_dim)
    k = keys.reshape(N, k_len, heads, head_dim)
    q = query.reshape(N, q_len, heads, head_dim)
    v = jnp.einsum("nlhd,ed->nlhe", v, params["Wv"])
    k = jnp.einsum("nlhd,ed->nlhe", k, params["Wk"])
    q = jnp.einsum("nlhd,ed->nlhe", q, params["Wq"])
    energy = jnp.einsum("nqhd,nkhd->nhqk", q, k)
    energy = jnp.where(mask == 0, -1e20, energy)
    attn = jax.nn.softmax(energy / math.sqrt(embed_size), axis=3)
    out = jnp.einsum("nhql,nlhd->nqhd", attn, v).reshape(N, q_len, heads * head_dim)
    return jnp.einsum("nqe,fe->nqf", out, params["Wo"]) + params["bo"]


if __name__ == "__main__":
    embed_size, heads = 32, 4
    head_dim = embed_size // heads
    N, seq = 2, 8

    key = jax.random.PRNGKey(0)
    ks = jax.random.split(key, 9)
    params = {
        "Wv": jax.random.normal(ks[0], (head_dim, head_dim), jnp.float32) * 0.1,
        "Wk": jax.random.normal(ks[1], (head_dim, head_dim), jnp.float32) * 0.1,
        "Wq": jax.random.normal(ks[2], (head_dim, head_dim), jnp.float32) * 0.1,
        "Wo": jax.random.normal(ks[3], (embed_size, heads * head_dim), jnp.float32) * 0.1,
        "bo": jax.random.normal(ks[4], (embed_size,), jnp.float32) * 0.1,
    }

    values = jax.random.normal(ks[5], (N, seq, embed_size), jnp.float32)
    keys_in = jax.random.normal(ks[6], (N, seq, embed_size), jnp.float32)
    query = jax.random.normal(ks[7], (N, seq, embed_size), jnp.float32)
    # 0/1 mask, broadcastable to (N, 1, q_len, k_len)
    mask = (jax.random.uniform(ks[8], (N, 1, seq, seq)) > 0.2).astype(jnp.float32)

    out = self_attention_forward(values, keys_in, query, mask, params,
                                 embed_size, heads)
    out = jax.block_until_ready(out)

    ref = self_attention_ref(values, keys_in, query, mask, params,
                             embed_size, heads)
    assert out.shape == (N, seq, embed_size)
    # Tolerance accounts for the approximate (EUP) reciprocal in the softmax.
    assert jnp.allclose(out, ref, atol=5e-3, rtol=5e-3), \
        f"max err {jnp.max(jnp.abs(out - ref))}"
    print("KERNEL_OK")
</pallas_src>

<mosaic_0001>
module attributes {stable_mosaic.version = 11 : i64} {
  func.func @_fused_self_attention_kernel(%arg0: i32, %arg1: memref<1x8x32xf32, #tpu.memory_space<vmem>>, %arg2: memref<1x8x32xf32, #tpu.memory_space<vmem>>, %arg3: memref<1x8x32xf32, #tpu.memory_space<vmem>>, %arg4: memref<1x1x8x8xi32, #tpu.memory_space<vmem>>, %arg5: memref<32x32xf32, #tpu.memory_space<vmem>>, %arg6: memref<32x32xf32, #tpu.memory_space<vmem>>, %arg7: memref<32x32xf32, #tpu.memory_space<vmem>>, %arg8: memref<32x32xf32, #tpu.memory_space<vmem>>, %arg9: memref<1x32xf32, #tpu.memory_space<vmem>>, %arg10: memref<1x8x32xf32, #tpu.memory_space<vmem>>) attributes {dimension_semantics = [#tpu.dimension_semantics<parallel>], iteration_bounds = array<i64: 2>, scalar_prefetch = 0 : i64, scratch_operands = 0 : i64, tpu.core_type = #tpu.core_type<tc>, window_params = [{transform_indices = @transform_0, window_bounds = array<i64: 1, 8, 32>}, {transform_indices = @transform_1, window_bounds = array<i64: 1, 8, 32>}, {transform_indices = @transform_2, window_bounds = array<i64: 1, 8, 32>}, {transform_indices = @transform_3, window_bounds = array<i64: 1, 1, 8, 8>}, {pipeline_mode = #tpu.pipeline_mode<synchronous>, transform_indices = @transform_4, window_bounds = array<i64: 32, 32>}, {pipeline_mode = #tpu.pipeline_mode<synchronous>, transform_indices = @transform_5, window_bounds = array<i64: 32, 32>}, {pipeline_mode = #tpu.pipeline_mode<synchronous>, transform_indices = @transform_6, window_bounds = array<i64: 32, 32>}, {pipeline_mode = #tpu.pipeline_mode<synchronous>, transform_indices = @transform_7, window_bounds = array<i64: 32, 32>}, {pipeline_mode = #tpu.pipeline_mode<synchronous>, transform_indices = @transform_8, window_bounds = array<i64: 1, 32>}, {transform_indices = @transform_9, window_bounds = array<i64: 1, 8, 32>}]} {
    %c0 = arith.constant 0 : index
    %c0_0 = arith.constant 0 : index
    %c0_1 = arith.constant 0 : index
    %0 = vector.load %arg1[%c0, %c0_0, %c0_1] : memref<1x8x32xf32, #tpu.memory_space<vmem>>, vector<1x8x32xf32>
    %1 = vector.shape_cast %0 : vector<1x8x32xf32> to vector<8x32xf32>
    %c0_2 = arith.constant 0 : index
    %c0_3 = arith.constant 0 : index
    %c0_4 = arith.constant 0 : index
    %2 = vector.load %arg2[%c0_2, %c0_3, %c0_4] : memref<1x8x32xf32, #tpu.memory_space<vmem>>, vector<1x8x32xf32>
    %3 = vector.shape_cast %2 : vector<1x8x32xf32> to vector<8x32xf32>
    %c0_5 = arith.constant 0 : index
    %c0_6 = arith.constant 0 : index
    %c0_7 = arith.constant 0 : index
    %4 = vector.load %arg3[%c0_5, %c0_6, %c0_7] : memref<1x8x32xf32, #tpu.memory_space<vmem>>, vector<1x8x32xf32>
    %5 = vector.shape_cast %4 : vector<1x8x32xf32> to vector<8x32xf32>
    %c0_8 = arith.constant 0 : index
    %c0_9 = arith.constant 0 : index
    %c0_10 = arith.constant 0 : index
    %c0_11 = arith.constant 0 : index
    %6 = vector.load %arg4[%c0_8, %c0_9, %c0_10, %c0_11] : memref<1x1x8x8xi32, #tpu.memory_space<vmem>>, vector<1x1x8x8xi32>
    %7 = vector.shape_cast %6 : vector<1x1x8x8xi32> to vector<8x8xi32>
    %c0_12 = arith.constant 0 : index
    %c0_13 = arith.constant 0 : index
    %8 = vector.load %arg5[%c0_12, %c0_13] : memref<32x32xf32, #tpu.memory_space<vmem>>, vector<32x32xf32>
    %cst = arith.constant dense<0.000000e+00> : vector<8x32xf32>
    %9 = tpu.matmul %1, %8, %cst {dimension_numbers = #tpu.dot_dimension_numbers<[1], [0], [0], [1], [0, 0, 1, 1], [], []>} : vector<8x32xf32>, vector<32x32xf32>, vector<8x32xf32> -> vector<8x32xf32>
    %c0_14 = arith.constant 0 : index
    %c0_15 = arith.constant 0 : index
    %10 = vector.load %arg6[%c0_14, %c0_15] : memref<32x32xf32, #tpu.memory_space<vmem>>, vector<32x32xf32>
    %cst_16 = arith.constant dense<0.000000e+00> : vector<8x32xf32>
    %11 = tpu.matmul %3, %10, %cst_16 {dimension_numbers = #tpu.dot_dimension_numbers<[1], [0], [0], [1], [0, 0, 1, 1], [], []>} : vector<8x32xf32>, vector<32x32xf32>, vector<8x32xf32> -> vector<8x32xf32>
    %c0_17 = arith.constant 0 : index
    %c0_18 = arith.constant 0 : index
    %12 = vector.load %arg7[%c0_17, %c0_18] : memref<32x32xf32, #tpu.memory_space<vmem>>, vector<32x32xf32>
    %cst_19 = arith.constant dense<0.000000e+00> : vector<8x32xf32>
    %13 = tpu.matmul %5, %12, %cst_19 {dimension_numbers = #tpu.dot_dimension_numbers<[1], [0], [0], [1], [0, 0, 1, 1], [], []>} : vector<8x32xf32>, vector<32x32xf32>, vector<8x32xf32> -> vector<8x32xf32>
    %cst_20 = arith.constant 0.000000e+00 : f32
    %14 = vector.broadcast %cst_20 : f32 to vector<8x32xf32>
    %15 = vector.extract_strided_slice %13 {offsets = [0, 0], sizes = [8, 8], strides = [1, 1]} : vector<8x32xf32> to vector<8x8xf32>
    %16 = vector.extract_strided_slice %11 {offsets = [0, 0], sizes = [8, 8], strides = [1, 1]} : vector<8x32xf32> to vector<8x8xf32>
    %17 = vector.extract_strided_slice %9 {offsets = [0, 0], sizes = [8, 8], strides = [1, 1]} : vector<8x32xf32> to vector<8x8xf32>
    %cst_21 = arith.constant dense<0.000000e+00> : vector<8x8xf32>
    %18 = tpu.matmul %15, %16, %cst_21 {dimension_numbers = #tpu.dot_dimension_numbers<[1], [1], [0], [0], [0, 0, 1, 0], [], []>} : vector<8x8xf32>, vector<8x8xf32>, vector<8x8xf32> -> vector<8x8xf32>
    %c0_i32 = arith.constant 0 : i32
    %19 = vector.broadcast %c0_i32 : i32 to vector<8x8xi32>
    %20 = arith.cmpi eq, %7, %19 : vector<8x8xi32>
    %cst_22 = arith.constant -1.000000e+20 : f32
    %21 = vector.broadcast %cst_22 : f32 to vector<8x8xf32>
    %22 = arith.select %20, %21, %18 : vector<8x8xi1>, vector<8x8xf32>
    %cst_23 = arith.constant 0.176776692 : f32
    %23 = vector.broadcast %cst_23 : f32 to vector<8x8xf32>
    %24 = arith.mulf %22, %23 : vector<8x8xf32>
    %cst_24 = arith.constant dense<0xFF800000> : vector<8xf32>
    %25 = vector.multi_reduction <maximumf>, %24, %cst_24 [1] : vector<8x8xf32> to vector<8xf32>
    %26 = vector.shape_cast %25 : vector<8xf32> to vector<8x1xf32>
    %27 = vector.broadcast %26 : vector<8x1xf32> to vector<8x8xf32>
    %28 = arith.subf %24, %27 : vector<8x8xf32>
    %29 = math.exp %28 : vector<8x8xf32>
    %cst_25 = arith.constant dense<0.000000e+00> : vector<8xf32>
    %30 = vector.multi_reduction <add>, %29, %cst_25 [1] : vector<8x8xf32> to vector<8xf32>
    %31 = vector.shape_cast %30 : vector<8xf32> to vector<8x1xf32>
    %32 = tpu.reciprocal %31 {approx = true} : vector<8x1xf32> -> vector<8x1xf32>
    %33 = vector.broadcast %32 : vector<8x1xf32> to vector<8x8xf32>
    %34 = arith.mulf %29, %33 : vector<8x8xf32>
    %cst_26 = arith.constant dense<0.000000e+00> : vector<8x8xf32>
    %35 = tpu.matmul %34, %17, %cst_26 {dimension_numbers = #tpu.dot_dimension_numbers<[1], [0], [0], [1], [0, 0, 1, 1], [], []>} : vector<8x8xf32>, vector<8x8xf32>, vector<8x8xf32> -> vector<8x8xf32>
    %c0_27 = arith.constant 0 : index
    %c0_28 = arith.constant 0 : index
    %36 = vector.load %arg8[%c0_27, %c0_28] : memref<32x32xf32, #tpu.memory_space<vmem>>, vector<8x32xf32>
    %cst_29 = arith.constant dense<0.000000e+00> : vector<8x32xf32>
    %37 = tpu.matmul %35, %36, %cst_29 {dimension_numbers = #tpu.dot_dimension_numbers<[1], [0], [0], [1], [0, 0, 1, 1], [], []>} : vector<8x8xf32>, vector<8x32xf32>, vector<8x32xf32> -> vector<8x32xf32>
    %38 = arith.addf %14, %37 : vector<8x32xf32>
    %39 = vector.extract_strided_slice %13 {offsets = [0, 8], sizes = [8, 8], strides = [1, 1]} : vector<8x32xf32> to vector<8x8xf32>
    %40 = vector.extract_strided_slice %11 {offsets = [0, 8], sizes = [8, 8], strides = [1, 1]} : vector<8x32xf32> to vector<8x8xf32>
    %41 = vector.extract_strided_slice %9 {offsets = [0, 8], sizes = [8, 8], strides = [1, 1]} : vector<8x32xf32> to vector<8x8xf32>
    %cst_30 = arith.constant dense<0.000000e+00> : vector<8x8xf32>
    %42 = tpu.matmul %39, %40, %cst_30 {dimension_numbers = #tpu.dot_dimension_numbers<[1], [1], [0], [0], [0, 0, 1, 0], [], []>} : vector<8x8xf32>, vector<8x8xf32>, vector<8x8xf32> -> vector<8x8xf32>
    %c0_i32_31 = arith.constant 0 : i32
    %43 = vector.broadcast %c0_i32_31 : i32 to vector<8x8xi32>
    %44 = arith.cmpi eq, %7, %43 : vector<8x8xi32>
    %cst_32 = arith.constant -1.000000e+20 : f32
    %45 = vector.broadcast %cst_32 : f32 to vector<8x8xf32>
    %46 = arith.select %44, %45, %42 : vector<8x8xi1>, vector<8x8xf32>
    %cst_33 = arith.constant 0.176776692 : f32
    %47 = vector.broadcast %cst_33 : f32 to vector<8x8xf32>
    %48 = arith.mulf %46, %47 : vector<8x8xf32>
    %cst_34 = arith.constant dense<0xFF800000> : vector<8xf32>
    %49 = vector.multi_reduction <maximumf>, %48, %cst_34 [1] : vector<8x8xf32> to vector<8xf32>
    %50 = vector.shape_cast %49 : vector<8xf32> to vector<8x1xf32>
    %51 = vector.broadcast %50 : vector<8x1xf32> to vector<8x8xf32>
    %52 = arith.subf %48, %51 : vector<8x8xf32>
    %53 = math.exp %52 : vector<8x8xf32>
    %cst_35 = arith.constant dense<0.000000e+00> : vector<8xf32>
    %54 = vector.multi_reduction <add>, %53, %cst_35 [1] : vector<8x8xf32> to vector<8xf32>
    %55 = vector.shape_cast %54 : vector<8xf32> to vector<8x1xf32>
    %56 = tpu.reciprocal %55 {approx = true} : vector<8x1xf32> -> vector<8x1xf32>
    %57 = vector.broadcast %56 : vector<8x1xf32> to vector<8x8xf32>
    %58 = arith.mulf %53, %57 : vector<8x8xf32>
    %cst_36 = arith.constant dense<0.000000e+00> : vector<8x8xf32>
    %59 = tpu.matmul %58, %41, %cst_36 {dimension_numbers = #tpu.dot_dimension_numbers<[1], [0], [0], [1], [0, 0, 1, 1], [], []>} : vector<8x8xf32>, vector<8x8xf32>, vector<8x8xf32> -> vector<8x8xf32>
    %c8 = arith.constant 8 : index
    %c0_37 = arith.constant 0 : index
    %60 = vector.load %arg8[%c8, %c0_37] : memref<32x32xf32, #tpu.memory_space<vmem>>, vector<8x32xf32>
    %cst_38 = arith.constant dense<0.000000e+00> : vector<8x32xf32>
    %61 = tpu.matmul %59, %60, %cst_38 {dimension_numbers = #tpu.dot_dimension_numbers<[1], [0], [0], [1], [0, 0, 1, 1], [], []>} : vector<8x8xf32>, vector<8x32xf32>, vector<8x32xf32> -> vector<8x32xf32>
    %62 = arith.addf %38, %61 : vector<8x32xf32>
    %63 = vector.extract_strided_slice %13 {offsets = [0, 16], sizes = [8, 8], strides = [1, 1]} : vector<8x32xf32> to vector<8x8xf32>
    %64 = vector.extract_strided_slice %11 {offsets = [0, 16], sizes = [8, 8], strides = [1, 1]} : vector<8x32xf32> to vector<8x8xf32>
    %65 = vector.extract_strided_slice %9 {offsets = [0, 16], sizes = [8, 8], strides = [1, 1]} : vector<8x32xf32> to vector<8x8xf32>
    %cst_39 = arith.constant dense<0.000000e+00> : vector<8x8xf32>
    %66 = tpu.matmul %63, %64, %cst_39 {dimension_numbers = #tpu.dot_dimension_numbers<[1], [1], [0], [0], [0, 0, 1, 0], [], []>} : vector<8x8xf32>, vector<8x8xf32>, vector<8x8xf32> -> vector<8x8xf32>
    %c0_i32_40 = arith.constant 0 : i32
    %67 = vector.broadcast %c0_i32_40 : i32 to vector<8x8xi32>
    %68 = arith.cmpi eq, %7, %67 : vector<8x8xi32>
    %cst_41 = arith.constant -1.000000e+20 : f32
    %69 = vector.broadcast %cst_41 : f32 to vector<8x8xf32>
    %70 = arith.select %68, %69, %66 : vector<8x8xi1>, vector<8x8xf32>
    %cst_42 = arith.constant 0.176776692 : f32
    %71 = vector.broadcast %cst_42 : f32 to vector<8x8xf32>
    %72 = arith.mulf %70, %71 : vector<8x8xf32>
    %cst_43 = arith.constant dense<0xFF800000> : vector<8xf32>
    %73 = vector.multi_reduction <maximumf>, %72, %cst_43 [1] : vector<8x8xf32> to vector<8xf32>
    %74 = vector.shape_cast %73 : vector<8xf32> to vector<8x1xf32>
    %75 = vector.broadcast %74 : vector<8x1xf32> to vector<8x8xf32>
    %76 = arith.subf %72, %75 : vector<8x8xf32>
    %77 = math.exp %76 : vector<8x8xf32>
    %cst_44 = arith.constant dense<0.000000e+00> : vector<8xf32>
    %78 = vector.multi_reduction <add>, %77, %cst_44 [1] : vector<8x8xf32> to vector<8xf32>
    %79 = vector.shape_cast %78 : vector<8xf32> to vector<8x1xf32>
    %80 = tpu.reciprocal %79 {approx = true} : vector<8x1xf32> -> vector<8x1xf32>
    %81 = vector.broadcast %80 : vector<8x1xf32> to vector<8x8xf32>
    %82 = arith.mulf %77, %81 : vector<8x8xf32>
    %cst_45 = arith.constant dense<0.000000e+00> : vector<8x8xf32>
    %83 = tpu.matmul %82, %65, %cst_45 {dimension_numbers = #tpu.dot_dimension_numbers<[1], [0], [0], [1], [0, 0, 1, 1], [], []>} : vector<8x8xf32>, vector<8x8xf32>, vector<8x8xf32> -> vector<8x8xf32>
    %c16 = arith.constant 16 : index
    %c0_46 = arith.constant 0 : index
    %84 = vector.load %arg8[%c16, %c0_46] : memref<32x32xf32, #tpu.memory_space<vmem>>, vector<8x32xf32>
    %cst_47 = arith.constant dense<0.000000e+00> : vector<8x32xf32>
    %85 = tpu.matmul %83, %84, %cst_47 {dimension_numbers = #tpu.dot_dimension_numbers<[1], [0], [0], [1], [0, 0, 1, 1], [], []>} : vector<8x8xf32>, vector<8x32xf32>, vector<8x32xf32> -> vector<8x32xf32>
    %86 = arith.addf %62, %85 : vector<8x32xf32>
    %87 = vector.extract_strided_slice %13 {offsets = [0, 24], sizes = [8, 8], strides = [1, 1]} : vector<8x32xf32> to vector<8x8xf32>
    %88 = vector.extract_strided_slice %11 {offsets = [0, 24], sizes = [8, 8], strides = [1, 1]} : vector<8x32xf32> to vector<8x8xf32>
    %89 = vector.extract_strided_slice %9 {offsets = [0, 24], sizes = [8, 8], strides = [1, 1]} : vector<8x32xf32> to vector<8x8xf32>
    %cst_48 = arith.constant dense<0.000000e+00> : vector<8x8xf32>
    %90 = tpu.matmul %87, %88, %cst_48 {dimension_numbers = #tpu.dot_dimension_numbers<[1], [1], [0], [0], [0, 0, 1, 0], [], []>} : vector<8x8xf32>, vector<8x8xf32>, vector<8x8xf32> -> vector<8x8xf32>
    %c0_i32_49 = arith.constant 0 : i32
    %91 = vector.broadcast %c0_i32_49 : i32 to vector<8x8xi32>
    %92 = arith.cmpi eq, %7, %91 : vector<8x8xi32>
    %cst_50 = arith.constant -1.000000e+20 : f32
    %93 = vector.broadcast %cst_50 : f32 to vector<8x8xf32>
    %94 = arith.select %92, %93, %90 : vector<8x8xi1>, vector<8x8xf32>
    %cst_51 = arith.constant 0.176776692 : f32
    %95 = vector.broadcast %cst_51 : f32 to vector<8x8xf32>
    %96 = arith.mulf %94, %95 : vector<8x8xf32>
    %cst_52 = arith.constant dense<0xFF800000> : vector<8xf32>
    %97 = vector.multi_reduction <maximumf>, %96, %cst_52 [1] : vector<8x8xf32> to vector<8xf32>
    %98 = vector.shape_cast %97 : vector<8xf32> to vector<8x1xf32>
    %99 = vector.broadcast %98 : vector<8x1xf32> to vector<8x8xf32>
    %100 = arith.subf %96, %99 : vector<8x8xf32>
    %101 = math.exp %100 : vector<8x8xf32>
    %cst_53 = arith.constant dense<0.000000e+00> : vector<8xf32>
    %102 = vector.multi_reduction <add>, %101, %cst_53 [1] : vector<8x8xf32> to vector<8xf32>
    %103 = vector.shape_cast %102 : vector<8xf32> to vector<8x1xf32>
    %104 = tpu.reciprocal %103 {approx = true} : vector<8x1xf32> -> vector<8x1xf32>
    %105 = vector.broadcast %104 : vector<8x1xf32> to vector<8x8xf32>
    %106 = arith.mulf %101, %105 : vector<8x8xf32>
    %cst_54 = arith.constant dense<0.000000e+00> : vector<8x8xf32>
    %107 = tpu.matmul %106, %89, %cst_54 {dimension_numbers = #tpu.dot_dimension_numbers<[1], [0], [0], [1], [0, 0, 1, 1], [], []>} : vector<8x8xf32>, vector<8x8xf32>, vector<8x8xf32> -> vector<8x8xf32>
    %c24 = arith.constant 24 : index
    %c0_55 = arith.constant 0 : index
    %108 = vector.load %arg8[%c24, %c0_55] : memref<32x32xf32, #tpu.memory_space<vmem>>, vector<8x32xf32>
    %cst_56 = arith.constant dense<0.000000e+00> : vector<8x32xf32>
    %109 = tpu.matmul %107, %108, %cst_56 {dimension_numbers = #tpu.dot_dimension_numbers<[1], [0], [0], [1], [0, 0, 1, 1], [], []>} : vector<8x8xf32>, vector<8x32xf32>, vector<8x32xf32> -> vector<8x32xf32>
    %110 = arith.addf %86, %109 : vector<8x32xf32>
    %c0_57 = arith.constant 0 : index
    %c0_58 = arith.constant 0 : index
    %111 = vector.load %arg9[%c0_57, %c0_58] : memref<1x32xf32, #tpu.memory_space<vmem>>, vector<1x32xf32>
    %112 = vector.broadcast %111 : vector<1x32xf32> to vector<8x32xf32>
    %113 = arith.addf %110, %112 : vector<8x32xf32>
    %c0_59 = arith.constant 0 : index
    %c0_60 = arith.constant 0 : index
    %c0_61 = arith.constant 0 : index
    %114 = vector.load %arg10[%c0_59, %c0_60, %c0_61] : memref<1x8x32xf32, #tpu.memory_space<vmem>>, vector<1x8x32xf32>
    %115 = vector.shape_cast %114 : vector<1x8x32xf32> to vector<8x32xf32>
    %116 = vector.shape_cast %113 : vector<8x32xf32> to vector<1x8x32xf32>
    tpu.vector_store %arg10[%c0_59, %c0_60, %c0_61], %116 {strides = array<i32>} : memref<1x8x32xf32, #tpu.memory_space<vmem>>, vector<1x8x32xf32>,
    return
  }
  func.func @transform_0(%arg0: i32) -> (i32, i32, i32) {
    %c0_i32 = arith.constant 0 : i32
    %c0_i32_0 = arith.constant 0 : i32
    %c0_i32_1 = arith.constant 0 : i32
    return %arg0, %c0_i32, %c0_i32_0 : i32, i32, i32
  }
  func.func @transform_1(%arg0: i32) -> (i32, i32, i32) {
    %c0_i32 = arith.constant 0 : i32
    %c0_i32_0 = arith.constant 0 : i32
    %c0_i32_1 = arith.constant 0 : i32
    return %arg0, %c0_i32, %c0_i32_0 : i32, i32, i32
  }
  func.func @transform_2(%arg0: i32) -> (i32, i32, i32) {
    %c0_i32 = arith.constant 0 : i32
    %c0_i32_0 = arith.constant 0 : i32
    %c0_i32_1 = arith.constant 0 : i32
    return %arg0, %c0_i32, %c0_i32_0 : i32, i32, i32
  }
  func.func @transform_3(%arg0: i32) -> (i32, i32, i32, i32) {
    %c0_i32 = arith.constant 0 : i32
    %c0_i32_0 = arith.constant 0 : i32
    %c0_i32_1 = arith.constant 0 : i32
    %c0_i32_2 = arith.constant 0 : i32
    return %arg0, %c0_i32, %c0_i32_0, %c0_i32_1 : i32, i32, i32, i32
  }
  func.func @transform_4(%arg0: i32) -> (i32, i32) {
    %c0_i32 = arith.constant 0 : i32
    %c0_i32_0 = arith.constant 0 : i32
    %c0_i32_1 = arith.constant 0 : i32
    return %c0_i32, %c0_i32_0 : i32, i32
  }
  func.func @transform_5(%arg0: i32) -> (i32, i32) {
    %c0_i32 = arith.constant 0 : i32
    %c0_i32_0 = arith.constant 0 : i32
    %c0_i32_1 = arith.constant 0 : i32
    return %c0_i32, %c0_i32_0 : i32, i32
  }
  func.func @transform_6(%arg0: i32) -> (i32, i32) {
    %c0_i32 = arith.constant 0 : i32
    %c0_i32_0 = arith.constant 0 : i32
    %c0_i32_1 = arith.constant 0 : i32
    return %c0_i32, %c0_i32_0 : i32, i32
  }
  func.func @transform_7(%arg0: i32) -> (i32, i32) {
    %c0_i32 = arith.constant 0 : i32
    %c0_i32_0 = arith.constant 0 : i32
    %c0_i32_1 = arith.constant 0 : i32
    return %c0_i32, %c0_i32_0 : i32, i32
  }
  func.func @transform_8(%arg0: i32) -> (i32, i32) {
    %c0_i32 = arith.constant 0 : i32
    %c0_i32_0 = arith.constant 0 : i32
    %c0_i32_1 = arith.constant 0 : i32
    return %c0_i32, %c0_i32_0 : i32, i32
  }
  func.func @transform_9(%arg0: i32) -> (i32, i32, i32) {
    %c0_i32 = arith.constant 0 : i32
    %c0_i32_0 = arith.constant 0 : i32
    %c0_i32_1 = arith.constant 0 : i32
    return %arg0, %c0_i32, %c0_i32_0 : i32, i32, i32
  }
}

</mosaic_0001>

<bundles_post_ra>
// kernel: tpu_custom_call.1
= control target key start
LH: loop header
LB: loop body
LE: loop exit
PB: predicated region body
PF: predicated region fallthrough
CT: control target
= control target key end

     0   :  { %s3133_s0 = inlined_call_operand.hbm [shape: f32[2,8,32], index: 0, kind: input, shape index: {}]   ;;  %s3134_s1 = inlined_call_operand.hbm [shape: f32[2,8,32], index: 1, kind: input, shape index: {}]   ;;  %s3135_s2 = inlined_call_operand.hbm [shape: f32[2,8,32], index: 2, kind: input, shape index: {}]   ;;  %s3136_s3 = inlined_call_operand.hbm [shape: s32[2,1,8,8], index: 3, kind: input, shape index: {}]   ;;  %s3137_s4 = inlined_call_operand.hbm [shape: f32[32,32], index: 4, kind: input, shape index: {}]   ;;  %s3138_s5 = inlined_call_operand.hbm [shape: f32[32,32], index: 5, kind: input, shape index: {}]   ;;  %s3139_s6 = inlined_call_operand.hbm [shape: f32[32,32], index: 6, kind: input, shape index: {}]   ;;  %s3140_s7 = inlined_call_operand.hbm [shape: f32[32,32], index: 7, kind: input, shape index: {}]   ;;  %s3141_s8 = inlined_call_operand.vmem [shape: f32[1,32], index: 8, kind: input, shape index: {}]   ;;  %s3142_s9 = inlined_call_operand.hbm [shape: f32[2,8,32], index: 9, kind: output, shape index: {}]  }
   0x1   :  { %3168 = sst [smem:[#allocation29_spill]] %s3134_s1 }
   0x2   :  { %3169 = sst [smem:[#allocation30_spill]] %s3137_s4 }
   0x3   :  { %3170 = sst [smem:[#allocation31_spill]] %s3138_s5 }
   0x4   :  { %3171 = sst [smem:[#allocation32_spill]] %s3141_s8 }
   0x5   :  { %3172 = sst [smem:[#allocation33_spill]] %s3142_s9 }
   0x6   :  { %14 = vsyncpa [#allocation3], 0 }
   0x7   :  { %16 = vsyncpa [#allocation3 + $0x1], 0 }
   0x8   :  { %17 = vsyncpa [#allocation6], 0 }
   0x9   :  { %19 = vsyncpa [#allocation6 + $0x1], 0 }
   0xa   :  { %20 = vsyncpa [#allocation9], 0 }
   0xb   :  { %22 = vsyncpa [#allocation9 + $0x1], 0 }
   0xc   :  { %23 = vsyncpa [#allocation12], 0 }
   0xd   :  { %24 = vsyncpa [#allocation15], 0 }
   0xe   :  { %25 = vsyncpa [#allocation4], 0 }
   0xf   :  { %27 = vsyncpa [#allocation4 + $0x1], 0  ;;  %s2623_s30 = smov 0   ;;  %s2625_s10 = smov 0  }
  0x10   :  { %s2627_s11 = smov 0   ;;  %s2629_s12 = smov 0  }
  0x11 LB: > { %3173 = sst [smem:[#allocation24_spill]] %s2542_s30  ;;  %s2644_s13 = sadd.s32 4294967295, %s2554_s12   ;;  %s2554_s12 = sphi %s2629_s12, %s3216_s12   ;;  %s2550_s11 = sphi %s2627_s11, %s3220_s11   ;;  %s2546_s10 = sphi %s2625_s10, %s3219_s10   ;;  %s2542_s30 = sphi %s2623_s30, %s3218_s30  }
  0x12   : > { %s1911_s14 = sadd.s32 4294967294, %s2554_s12   ;;  %p53_p0 = scmp.ne.s32.totalorder %s2546_s10, %s2542_s30 }
  0x13   : > { %p3143_p1 = scmp.eq.s32.totalorder %s2644_s13, 0  ;;  %p266_p3 = scmp.eq.s32.totalorder %s1911_s14, 1 }
  0x14   : > { %p1912_p5 = scmp.ge.s32.totalorder %s2554_s12, 1  ;;  %p273_p7 = scmp.lt.s32.totalorder %s2554_s12, 3 }
  0x15   : > { %p2653_p4 = por %p3143_p1, %p53_p0  ;;  %p2658_p6 = por %p266_p3, %p53_p0 }
  0x16   : > { %p2663_p8 = pnand %p1912_p5, %p273_p7  ;;  %s2556_s18 = smov [#allocation10]  }
  0x17   : > { %s3174_s15 = scalar_select %p2653_p4, 1, 0 }
  0x18   : > { %s3175_s16 = scalar_select %p2658_p6, 1, 0 }
  0x19   : > { %s3177_s17 = scalar_select %p2663_p8, 1, 0 }
  0x1a   : > { %3176 = sst [smem:[#allocation25_spill]] %s3175_s16  ;;  %s285_s19 = sshll.u32 %s2556_s18, 4  ;;  %s2667_s19 = int_to_ptr.vmem [resolvable:$true] %s285_s19 }
  0x1b   : > { %p2136_p9 = pneg %p2663_p8  ;;  %s2557_s21 = smov [#allocation11]  }
  0x1c   : > { %s298_s22 = sshll.u32 %s2557_s21, 4  ;;  %s3179_s4 = sld [smem:[#allocation30_spill]]  ;;  %s2678_s22 = int_to_ptr.vmem [resolvable:$true] %s298_s22 }
  0x1d   : > { %p2674_p11 = pnand %p2136_p9, %p3143_p1 }
  0x1f   : > { %s3178_s20 = scalar_select %p2674_p11, 1, 0 }
  0x20   : > { %p2688_p13 = pneg %p2674_p11 }
  0x22   : > { %s2236_s25 = scalar_lea.hbm %s3179_s4, 512 }
  0x23   : > { %p2237_p12 = scmp.ne.s32.totalorder %s3179_s4, %s2236_s25  ;;  %p2243_p5 = scmp.lt.u32.totalorder %s2236_s25, %s3179_s4 }
  0x24   : > { %s3180_s28 = scalar_select %p2688_p13, 1, 0 }
  0x25   : > { %p2239_p0 = pnand %p2688_p13, %p2237_p12 }
  0x27   : > { %p2240_p3 = pneg %p2239_p0 }
  0x29   : > { %p2245_p7 = pnand %p2243_p5, %p2240_p3 }
  0x2b   : > { %2248 = shalt.err (!%p2245_p7)
}
  0x2c   : > { %s2249_s18 = scalar_lea.vmem %s2667_s19, 512  ;;  %p2257_p2 = scmp.lt.s32.totalorder %s2667_s19, %s2667_s19 }
  0x2d   : > { %p2250_p9 = scmp.ne.s32.totalorder %s2667_s19, %s2249_s18  ;;  %p2258_p6 = scmp.lt.s32.totalorder %s2249_s18, %s2249_s18 }
  0x2f   : > { %p2252_p10 = pnand %p2250_p9, %p2688_p13  ;;  %p2259_p12 = por %p2258_p6, %p2257_p2 }
  0x31   : > { %p2253_p1 = pneg %p2252_p10 }
  0x33   : > { %p2260_p0 = pnand %p2259_p12, %p2253_p1 }
  0x35   : > { %2263 = shalt.err (!%p2260_p0)
}
  0x36   : > { %s3147_s21 = smov 128   ;;  %s3149_s23 = smov 8  }
  0x37   : > { %2139 = dma.hbm_to_vmem [thread:$0]  (!%p2674_p11), %s3179_s4, 512, %s2667_s19, [#allocation9], %s3147_s21, %s3147_s21, %s3149_s23  }
  0x38   : > { %s3181_s5 = sld [smem:[#allocation31_spill]] }
  0x3e   : > { %s2264_s29 = scalar_lea.hbm %s3181_s5, 512 }
  0x3f   : > { %p2265_p1 = scmp.ne.s32.totalorder %s3181_s5, %s2264_s29  ;;  %p2271_p10 = scmp.lt.u32.totalorder %s2264_s29, %s3181_s5 }
  0x41   : > { %p2267_p2 = pnand %p2265_p1, %p2688_p13 }
  0x43   : > { %p2268_p6 = pneg %p2267_p2 }
  0x45   : > { %p2273_p3 = pnand %p2271_p10, %p2268_p6 }
  0x47   : > { %2276 = shalt.err (!%p2273_p3)
}
  0x48   : > { %s2277_s19 = scalar_lea.vmem %s2678_s22, 512  ;;  %p2285_p12 = scmp.lt.s32.totalorder %s2678_s22, %s2678_s22 }
  0x49   : > { %p2278_p5 = scmp.ne.s32.totalorder %s2678_s22, %s2277_s19  ;;  %p2286_p0 = scmp.lt.s32.totalorder %s2277_s19, %s2277_s19 }
  0x4b   : > { %p2280_p7 = pnand %p2278_p5, %p2688_p13  ;;  %p2287_p1 = por %p2286_p0, %p2285_p12 }
  0x4d   : > { %p2281_p9 = pneg %p2280_p7 }
  0x4f   : > { %p2288_p2 = pnand %p2287_p1, %p2281_p9 }
  0x51   : > { %2291 = shalt.err (!%p2288_p2)
}
  0x52   : > { %2142 = dma.hbm_to_vmem [thread:$0]  (!%p2674_p11), %s3181_s5, 512, %s2678_s22, [#allocation12], %s3147_s21, %s3147_s21, %s3149_s23  }
  0x53   : > { %s2739_s24 = sadd.s32 1, %s2554_s12   ;;  %s40_s25 = sadd.s32 1, %s2550_s11 }
  0x54   : > { %3182 = sst [smem:[#allocation26_spill]] %s2739_s24  ;;  %s37_s26 = ssub.s32 %s2554_s12, %s2739_s24 }
  0x55   : > { %p47_p6 = scmp.ne.s32.totalorder %s2550_s11, %s2546_s10  ;;  %p38_p10 = scmp.eq.s32.totalorder %s37_s26, 0 }
  0x56   : > { %p48_p3 = scmp.eq.s32.totalorder %s2554_s12, 0  ;;  %p3183_p5 = scmp.eq.s32.totalorder %s2644_s13, 1 }
  0x57   : > { %p2170_p9 = scmp.lt.s32.totalorder %s2554_s12, 2  ;;  %s3146_s14 = sand.u32 1, %s2550_s11  }
  0x58   : > { %p2749_p7 = por %p3183_p5, %p47_p6  ;;  %p49_p12 = por %p48_p3, %p47_p6 }
  0x59   : > { %s2755_s29 = scalar_select %p38_p10, %s2550_s11, %s40_s25  }
  0x5a   : > { %s3184_s27 = scalar_select %p2749_p7, 1, 0 }
  0x5b   : > { %3186 = sst [smem:[#allocation28_spill]] %s2755_s29  ;;  %s2760_s22 = sshll.u32 %s3146_s14, 3 }
  0x5c   : > { %3185 = sst [smem:[#allocation27_spill]] %s3184_s27  ;;  %s2763_s18 = sshll.u32 %s2554_s12, 7 }
  0x5d   : > { %p2765_p0 = pnand %p2170_p9, %p49_p12  ;;  %s3155_s30 = sand.u32 1, %s2554_s12  }
  0x5e   : > { %s3188_s1 = sld [smem:[#allocation29_spill]]  ;;  %s363_s14 = scalar_lea.vmem [#allocation5], %s2760_s22 }
  0x5f   : > { %s3187_s19 = scalar_select %p2765_p0, 1, 0 }
  0x60   : > { %s370_s21 = sshll.u32 %s363_s14, 4  ;;  %s2781_s23 = scalar_lea.sflag [#allocation6], %s3155_s30  ;;  %s2777_s21 = int_to_ptr.vmem [resolvable:$true] %s370_s21 }
  0x61   : > { %p2787_p2 = pneg %p2765_p0 }
  0x63   : > { %s3189_s5 = scalar_select %p2787_p2, 1, 0 }
  0x64   : > { %s2774_s25 = scalar_lea.hbm %s3188_s1, %s2763_s18  ;;  %s2297_s14 = scalar_lea.hbm %s3188_s1, 256 }
  0x65   : > { %s2292_s4 = scalar_lea.hbm %s2774_s25, 128  ;;  %p2298_p3 = scmp.lt.u32.totalorder %s2774_s25, %s3188_s1 }
  0x66   : > { %p2293_p1 = scmp.ne.s32.totalorder %s2774_s25, %s2292_s4  ;;  %p2299_p5 = scmp.lt.u32.totalorder %s2297_s14, %s2292_s4 }
  0x67   : > { %p2301_p12 = scmp.lt.u32.totalorder %s2292_s4, %s2774_s25 }
  0x68   : > { %p2295_p6 = pnand %p2787_p2, %p2293_p1  ;;  %p2300_p9 = por %p2299_p5, %p2298_p3 }
  0x6a   : > { %p2296_p10 = pneg %p2295_p6  ;;  %p2302_p7 = por %p2301_p12, %p2300_p9 }
  0x6c   : > { %p2303_p4 = pnand %p2302_p7, %p2296_p10 }
  0x6e   : > { %2306 = shalt.err (!%p2303_p4)
}
  0x6f   : > { %s2307_s30 = scalar_lea.vmem %s2777_s21, 128  ;;  %s2560_s16 = smov [#allocation5]  }
  0x70   : > { %p2308_p1 = scmp.ne.s32.totalorder %s2777_s21, %s2307_s30  ;;  %s2312_s26 = sshll.u32 %s2560_s16, 4  ;;  %s2313_s26 = int_to_ptr.vmem [resolvable:$false] %s2312_s26 }
  0x71   : > { %s2314_s24 = scalar_lea.vmem %s2313_s26, 256  ;;  %p2315_p11 = scmp.lt.s32.totalorder %s2777_s21, %s2313_s26 }
  0x72   : > { %p2310_p6 = pnand %p2308_p1, %p2787_p2  ;;  %p2316_p13 = scmp.lt.s32.totalorder %s2314_s24, %s2307_s30 }
  0x74   : > { %p2311_p8 = pneg %p2310_p6  ;;  %p2317_p3 = por %p2316_p13, %p2315_p11 }
  0x76   : > { %p2318_p5 = pnand %p2317_p3, %p2311_p8 }
  0x78   : > { %2321 = shalt.err (!%p2318_p5)
}
  0x79   : > { %2155 = dma.hbm_to_vmem [thread:$0]  (!%p2765_p0), %s2774_s25, 128, %s2777_s21, %s2781_s23  }
  0x7a   : > { %s2561_s4 = smov [#allocation13]   ;;  %s2562_s14 = smov [#allocation14]  }
  0x7b   : > { %s311_s29 = sshll.u32 %s2561_s4, 4  ;;  %s324_s1 = sshll.u32 %s2562_s14, 4  ;;  %s312_s29 = int_to_ptr.vmem [resolvable:$true] %s311_s29  ;;  %s325_s1 = int_to_ptr.vmem [resolvable:$true] %s324_s1 }
  0x7c   : > { %s2322_s26 = scalar_lea.hbm %s3139_s6, 512  ;;  %p3190_p8 = scmp.ne.s32.totalorder %s3180_s28, 0 }
  0x7d   : > { %p2323_p4 = scmp.ne.s32.totalorder %s3139_s6, %s2322_s26  ;;  %p2329_p7 = scmp.lt.u32.totalorder %s2322_s26, %s3139_s6 }
  0x7f   : > { %p2325_p11 = pnand %p2323_p4, %p3190_p8 }
  0x81   : > { %p2326_p13 = pneg %p2325_p11 }
  0x83   : > { %p2331_p10 = pnand %p2329_p7, %p2326_p13 }
  0x85   : > { %2334 = shalt.err (!%p2331_p10)
}
  0x86   : > { %s2335_s21 = scalar_lea.vmem %s312_s29, 512  ;;  %p2343_p6 = scmp.lt.s32.totalorder %s312_s29, %s312_s29 }
  0x87   : > { %p2336_p9 = scmp.ne.s32.totalorder %s312_s29, %s2335_s21  ;;  %p2344_p3 = scmp.lt.s32.totalorder %s2335_s21, %s2335_s21 }
  0x89   : > { %p2338_p12 = pnand %p2336_p9, %p3190_p8  ;;  %p2345_p5 = por %p2344_p3, %p2343_p6 }
  0x8b   : > { %p2339_p1 = pneg %p2338_p12 }
  0x8d   : > { %p2346_p0 = pnand %p2345_p5, %p2339_p1 }
  0x8f   : > { %2349 = shalt.err (!%p2346_p0)
}
  0x90   : > { %p3191_p4 = scmp.ne.s32.totalorder %s3178_s20, 0  ;;  %s3192_s9 = smov 8  }
  0x91   : > { %s3193_s25 = smov 128   ;;  %s2350_s16 = scalar_lea.hbm %s3140_s7, 512 }
  0x92   : > { %2145 = dma.hbm_to_vmem [thread:$0]  (!%p3191_p4), %s3139_s6, 512, %s312_s29, [#allocation12], %s3193_s25, %s3193_s25, %s3192_s9  }
  0x93   : > { %p2351_p11 = scmp.ne.s32.totalorder %s3140_s7, %s2350_s16  ;;  %p2357_p7 = scmp.lt.u32.totalorder %s2350_s16, %s3140_s7 }
  0x95   : > { %p2353_p0 = pnand %p2351_p11, %p3190_p8 }
  0x97   : > { %p2354_p13 = pneg %p2353_p0 }
  0x99   : > { %p2359_p10 = pnand %p2357_p7, %p2354_p13 }
  0x9b   : > { %2362 = shalt.err (!%p2359_p10)
}
  0x9c   : > { %s2363_s8 = scalar_lea.vmem %s325_s1, 512  ;;  %p2371_p6 = scmp.lt.s32.totalorder %s325_s1, %s325_s1 }
  0x9d   : > { %p2364_p9 = scmp.ne.s32.totalorder %s325_s1, %s2363_s8  ;;  %p2372_p3 = scmp.lt.s32.totalorder %s2363_s8, %s2363_s8 }
  0x9f   : > { %p2366_p12 = pnand %p2364_p9, %p3190_p8  ;;  %p2373_p5 = por %p2372_p3, %p2371_p6 }
  0xa1   : > { %p2367_p1 = pneg %p2366_p12 }
  0xa3   : > { %p2374_p2 = pnand %p2373_p5, %p2367_p1 }
  0xa5   : > { %2377 = shalt.err (!%p2374_p2)
}
  0xa6   : > { %2148 = dma.hbm_to_vmem [thread:$0]  (!%p3191_p4), %s3140_s7, 512, %s325_s1, [#allocation15], %s3193_s25, %s3193_s25, %s3192_s9  }
  0xa7   : > { %s2857_s14 = scalar_lea.hbm %s3133_s0, %s2763_s18  ;;  %s345_s20 = scalar_lea.vmem [#allocation2], %s2760_s22 }
  0xa8   : > { %s352_s16 = sshll.u32 %s345_s20, 4  ;;  %s2866_s24 = scalar_lea.hbm %s3135_s2, %s2763_s18  ;;  %s2860_s16 = int_to_ptr.vmem [resolvable:$true] %s352_s16 }
  0xa9   : > { %s3194_s21 = sand.u32 1, %s2550_s11   ;;  %s2378_s9 = scalar_lea.hbm %s2857_s14, 128 }
  0xaa   : > { %s342_s1 = scalar_lea.sflag [#allocation3], %s3194_s21  ;;  %p2379_p2 = scmp.ne.s32.totalorder %s2857_s14, %s2378_s9 }
  0xab   : > { %p3195_p8 = scmp.ne.s32.totalorder %s3189_s5, 0  ;;  %s2383_s29 = scalar_lea.hbm %s3133_s0, 256 }
  0xac   : > { %p2384_p0 = scmp.lt.u32.totalorder %s2857_s14, %s3133_s0  ;;  %p2385_p13 = scmp.lt.u32.totalorder %s2383_s29, %s2378_s9 }
  0xad   : > { %p2381_p4 = pnand %p2379_p2, %p3195_p8  ;;  %p2387_p10 = scmp.lt.u32.totalorder %s2378_s9, %s2857_s14 }
  0xae   : > { %p2386_p7 = por %p2385_p13, %p2384_p0 }
  0xaf   : > { %p2382_p11 = pneg %p2381_p4 }
  0xb0   : > { %p2388_p9 = por %p2387_p10, %p2386_p7 }
  0xb2   : > { %p2389_p12 = pnand %p2388_p9, %p2382_p11 }
  0xb4   : > { %2392 = shalt.err (!%p2389_p12)
}
  0xb5   : > { %s2393_s4 = scalar_lea.vmem %s2860_s16, 128  ;;  %s2563_s20 = smov [#allocation2]  }
  0xb6   : > { %p2394_p1 = scmp.ne.s32.totalorder %s2860_s16, %s2393_s4  ;;  %s2398_s26 = sshll.u32 %s2563_s20, 4  ;;  %s2399_s26 = int_to_ptr.vmem [resolvable:$false] %s2398_s26 }
  0xb7   : > { %s2400_s30 = scalar_lea.vmem %s2399_s26, 256  ;;  %p2401_p5 = scmp.lt.s32.totalorder %s2860_s16, %s2399_s26 }
  0xb8   : > { %p2396_p6 = pnand %p2394_p1, %p3195_p8  ;;  %p2402_p2 = scmp.lt.s32.totalorder %s2400_s30, %s2393_s4 }
  0xba   : > { %p2397_p3 = pneg %p2396_p6  ;;  %p2403_p4 = por %p2402_p2, %p2401_p5 }
  0xbc   : > { %p2404_p0 = pnand %p2403_p4, %p2397_p3 }
  0xbe   : > { %2407 = shalt.err (!%p2404_p0)
}
  0xbf   : > { %p3196_p11 = scmp.ne.s32.totalorder %s3187_s19, 0  ;;  %s381_s21 = scalar_lea.vmem [#allocation7], %s2760_s22 }
  0xc0   : > { %s388_s9 = sshll.u32 %s381_s21, 4  ;;  %s2896_s29 = scalar_lea.hbm %s3136_s3, %s2763_s18  ;;  %s389_s9 = int_to_ptr.vmem [resolvable:$true] %s388_s9 }
  0xc1   : > { %2152 = dma.hbm_to_vmem [thread:$0]  (!%p3196_p11), %s2857_s14, 128, %s2860_s16, %s342_s1  }
  0xc2   : > { %s2408_s27 = scalar_lea.hbm %s2866_s24, 128  ;;  %s2413_s20 = scalar_lea.hbm %s3135_s2, 256 }
  0xc3   : > { %p2409_p13 = scmp.ne.s32.totalorder %s2866_s24, %s2408_s27  ;;  %p2414_p9 = scmp.lt.u32.totalorder %s2866_s24, %s3135_s2 }
  0xc4   : > { %p2415_p12 = scmp.lt.u32.totalorder %s2413_s20, %s2408_s27  ;;  %p2417_p6 = scmp.lt.u32.totalorder %s2408_s27, %s2866_s24 }
  0xc5   : > { %p2411_p7 = pnand %p2409_p13, %p3195_p8 }
  0xc6   : > { %p2416_p1 = por %p2415_p12, %p2414_p9 }
  0xc7   : > { %p2412_p10 = pneg %p2411_p7 }
  0xc8   : > { %p2418_p3 = por %p2417_p6, %p2416_p1 }
  0xca   : > { %p2419_p5 = pnand %p2418_p3, %p2412_p10 }
  0xcc   : > { %2422 = shalt.err (!%p2419_p5)
}
  0xcd   : > { %s2423_s18 = scalar_lea.vmem %s389_s9, 128  ;;  %s2564_s14 = smov [#allocation7]  }
  0xce   : > { %p2424_p2 = scmp.ne.s32.totalorder %s389_s9, %s2423_s18  ;;  %s2428_s16 = sshll.u32 %s2564_s14, 4  ;;  %s2429_s16 = int_to_ptr.vmem [resolvable:$false] %s2428_s16 }
  0xcf   : > { %s2430_s1 = scalar_lea.vmem %s2429_s16, 256  ;;  %p2431_p13 = scmp.lt.s32.totalorder %s389_s9, %s2429_s16 }
  0xd0   : > { %p2426_p4 = pnand %p2424_p2, %p3195_p8  ;;  %p2432_p7 = scmp.lt.s32.totalorder %s2430_s1, %s2423_s18 }
  0xd2   : > { %p2427_p0 = pneg %p2426_p4  ;;  %p2433_p11 = por %p2432_p7, %p2431_p13 }
  0xd4   : > { %p2434_p9 = pnand %p2433_p11, %p2427_p0 }
  0xd6   : > { %2437 = shalt.err (!%p2434_p9)
}
  0xd7   : > { %p3197_p12 = scmp.ne.s32.totalorder %s3187_s19, 0  ;;  %s399_s21 = scalar_lea.vmem [#allocation8], %s2760_s22 }
  0xd8   : > { %s406_s25 = sshll.u32 %s399_s21, 4  ;;  %s3198_s8 = sand.u32 1, %s2554_s12   ;;  %s407_s25 = int_to_ptr.vmem [resolvable:$true] %s406_s25 }
  0xd9   : > { %2158 = dma.hbm_to_vmem [thread:$0]  (!%p3197_p12), %s2866_s24, 128, %s389_s9, %s2781_s23  }
  0xda   : > { %s396_s27 = scalar_lea.sflag [#allocation9], %s3198_s8  ;;  %s2438_s28 = scalar_lea.hbm %s2896_s29, 128 }
  0xdb   : > { %p2439_p11 = scmp.ne.s32.totalorder %s2896_s29, %s2438_s28  ;;  %s2443_s26 = scalar_lea.hbm %s3136_s3, 256 }
  0xdc   : > { %p2444_p6 = scmp.lt.u32.totalorder %s2896_s29, %s3136_s3  ;;  %p2445_p3 = scmp.lt.u32.totalorder %s2443_s26, %s2438_s28 }
  0xdd   : > { %p2441_p10 = pnand %p2439_p11, %p3195_p8  ;;  %p2447_p2 = scmp.lt.u32.totalorder %s2438_s28, %s2896_s29 }
  0xde   : > { %p2446_p5 = por %p2445_p3, %p2444_p6 }
  0xdf   : > { %p2442_p1 = pneg %p2441_p10 }
  0xe0   : > { %p2448_p4 = por %p2447_p2, %p2446_p5 }
  0xe2   : > { %p2449_p0 = pnand %p2448_p4, %p2442_p1 }
  0xe4   : > { %2452 = shalt.err (!%p2449_p0)
}
  0xe5   : > { %s2453_s23 = scalar_lea.vmem %s407_s25, 128  ;;  %s2565_s22 = smov [#allocation8]  }
  0xe6   : > { %p2454_p13 = scmp.ne.s32.totalorder %s407_s25, %s2453_s23  ;;  %s2458_s24 = sshll.u32 %s2565_s22, 4  ;;  %s2459_s24 = int_to_ptr.vmem [resolvable:$false] %s2458_s24 }
  0xe7   : > { %s2460_s9 = scalar_lea.vmem %s2459_s24, 256  ;;  %p2461_p11 = scmp.lt.s32.totalorder %s407_s25, %s2459_s24 }
  0xe8   : > { %p2456_p7 = pnand %p2454_p13, %p3195_p8  ;;  %p2462_p10 = scmp.lt.s32.totalorder %s2460_s9, %s2453_s23 }
  0xea   : > { %p2457_p9 = pneg %p2456_p7  ;;  %p2463_p12 = por %p2462_p10, %p2461_p11 }
  0xec   : > { %p2464_p3 = pnand %p2463_p12, %p2457_p9 }
  0xee   : > { %2467 = shalt.err (!%p2464_p3)
}
  0xef   : > { %p3199_p6 = scmp.ne.s32.totalorder %s3187_s19, 0  ;;  %p3200_p1 = scmp.ne.s32.totalorder %s3177_s17, 0 }
  0xf0   : > { %s2939_s5 = sand.u32 (!%p3200_p1), 1, %s2546_s10   ;;  %p3201_p8 = scmp.ne.s32.totalorder (!%p3200_p1), %s3174_s15, 0 }
  0xf1   : > { %2161 = dma.hbm_to_vmem [thread:$0]  (!%p3199_p6), %s2896_s29, 128, %s407_s25, %s396_s27  }
  0xf2   : > { %415 = sbr.rel (%p3200_p1) target bundleno = 2860 (0xb2c), region = 56  ;;  %s2942_s14 = sshll.u32 (!%p3200_p1), %s2939_s5, 3 }
  0xf3   : > { %s418_s16 = scalar_lea.sflag (!%p3200_p1), [#allocation3], %s2939_s5  ;;  %s421_s1 = scalar_lea.vmem (!%p3200_p1), [#allocation2], %s2942_s14 }
  0xf9   : > { %2513 = dma.done.wait (%p3201_p8), %s418_s16, 128  }
  0xfa   : > { %2515 = vsyncadd (%p3201_p8), %s418_s16, 4294967168  ;;  %s426_s17 = sand.u32 1, %s2644_s13   ;;  %s430_s29 = scalar_lea.vmem [#allocation5], %s2942_s14 }
  0xfb   : > { %s427_s19 = scalar_lea.sflag [#allocation6], %s426_s17 }
  0xfc   : > { %2517 = dma.done.wait (%p3201_p8), %s427_s19, 256  }
  0xfd   : > { %2519 = vsyncadd (%p3201_p8), %s427_s19, 4294967040  ;;  %s439_s21 = scalar_lea.vmem [#allocation7], %s2942_s14  ;;  %s445_s25 = scalar_lea.sflag [#allocation9], %s426_s17 }
  0xfe   : > { %s448_s8 = scalar_lea.vmem [#allocation8], %s2942_s14 }
  0xff   : > { %2521 = dma.done.wait (%p3201_p8), %s445_s25, 128  }
 0x100   : > { %2523 = vsyncadd (%p3201_p8), %s445_s25, 4294967168  ;;  %p3202_p12 = scmp.eq.s32.totalorder %s2644_s13, 0 }
 0x102   : > { %2525 = dma.done.wait (%p3202_p12), [#allocation9], 512   ;;  %p3203_p5 = pmov %p3202_p12 }
 0x104   : > { %2527 = vsyncadd (%p3203_p5), [#allocation9], 4294966784  ;;  %p3204_p2 = pmov %p3203_p5 }
 0x106   : > { %2529 = dma.done.wait (%p3204_p2), [#allocation12], 1024   ;;  %p3205_p4 = pmov %p3204_p2 }
 0x107   : > { %p3206_p0 = pmov %p3204_p2 }
 0x108   : > { %2531 = vsyncadd (%p3205_p4), [#allocation12], 4294966272 }
 0x109   : > { %2533 = dma.done.wait (%p3206_p0), [#allocation15], 512   ;;  %p3207_p13 = pmov %p3206_p0 }
 0x10a   : > { %v2566_v0 = vmov 0.0|0.0   ;;  %vm2567_vm0 = vmmov 0   ;;  %v2568_v1 = vmov 0.0   ;;  %v518_v2 = vld [vmem:[#allocation10] sm:$0xff]  ;;  %v519_v3 = vld [vmem:[#allocation10 + $0x8] sm:$0xff]  ;;  %v520_v7 = vld [vmem:[#allocation10 + $0x10] sm:$0xff] }
 0x10b   : > { %2535 = vsyncadd (%p3207_p13), [#allocation15], 4294966784  ;;  %2092 = vmatprep.subr.bf16.mxu0 %v2566_v0  ;;  %2098 = vmatprep.subr.bf16.mxu1 %v2566_v0  ;;  %v596_v4 = vld [vmem:[#allocation11] sm:$0xff]  ;;  %v2093_v5 = vpack.c.bf16 %v519_v3, %v518_v2  ;;  %v597_v6 = vld [vmem:[#allocation11 + $0x8] sm:$0xff]  ;;  %vm522_vm1 = vcmask 261120   ;;  %vm750_vm2 = vcmask 64512  }
 0x10c   : > { %2007 = vmatprep.mubr.msk.f32.mxu0 %vm2567_vm0, %v2568_v1  ;;  %2018 = vmatprep.mubr.msk.f32.mxu1 %vm2567_vm0, %v2568_v1  ;;  %v521_v8 = vld [vmem:[#allocation10 + $0x18] sm:$0xff]  ;;  %v2099_v9 = vpack.c.bf16 %v597_v6, %v596_v4  ;;  %v598_v10 = vld [vmem:[#allocation11 + $0x10] sm:$0xff]  ;;  %v673_v14 = vld [vmem:[#allocation13] sm:$0xff]  ;;  %s2569_s15 = smov 120   ;;  %s2570_s27 = smov 112  }
 0x10d   : > { %v599_v11 = vld [vmem:[#allocation11 + $0x18] sm:$0xff]  ;;  %2094 = vmatpush3.bf16.msra.mxu0 %v2093_v5  ;;  %v2096_v12 = vpack.c.bf16 %v521_v8, %v520_v7  ;;  %v674_v15 = vld [vmem:[#allocation13 + $0x8] sm:$0xff]  ;;  %v675_v19 = vld [vmem:[#allocation13 + $0x10] sm:$0xff]  ;;  %s2571_s28 = smov 104   ;;  %s3208_s4 = sld [smem:[#allocation27_spill]] }
 0x10e   : > { %2095 = vmatprep.subr.bf16.mxu0 %v2566_v0  ;;  %2100 = vmatpush3.bf16.msra.mxu1 %v2099_v9  ;;  %v2102_v13 = vpack.c.bf16 %v599_v11, %v598_v10  ;;  %v514_v16 = vld [vmem:[%s421_s1] sm:$0xff]  ;;  %v2105_v17 = vpack.c.bf16 %v674_v15, %v673_v14  ;;  %v515_v18 = vld [vmem:[%s430_s29] sm:$0xff]  ;;  %s3209_s30 = sld [smem:[#allocation32_spill]]  ;;  %s1957_s18 = sshll.u32 %s2644_s13, 7 }
 0x10f   : > { %2101 = vmatprep.subr.bf16.mxu1 %v2566_v0  ;;  %v676_v20 = vld [vmem:[#allocation13 + $0x18] sm:$0xff]  ;;  %v516_v22 = vld [vmem:[%s439_s21] sm:$0xff]  ;;  %s513_s23 = scalar_lea.vmem [#allocation16], %s2942_s14  ;;  %s3210_s16 = sld [smem:[#allocation33_spill]] }
 0x110   : > { %v2108_v21 = vpack.c.bf16 %v676_v20, %v675_v19  ;;  %v3017_v31 = vld [vmem:[%s448_s8] sm:$0xff]  ;;  %v1083_v55 = vld [vmem:[#allocation14 + $0x8] sm:$0xff]  ;;  %v914_v60 = vld [vmem:[#allocation14] sm:$0xff]  ;;  %s1737_s22 = sshll.u32 %s513_s23, 4  ;;  %s1724_s17 = scalar_lea.sflag [#allocation4], %s2939_s5  ;;  %s3090_s22 = int_to_ptr.vmem [resolvable:$true] %s1737_s22 }
 0x111   : > { %2097 = vmatpush3.bf16.msra.mxu0 %v2096_v12  ;;  %vm827_vm3 = vcmp.eq.s32.totalorder %v3017_v31, 0  ;;  %s2468_s19 = scalar_lea.vmem %s3090_s22, 128  ;;  %s2572_s13 = smov [#allocation16]  }
 0x112   : > { %2103 = vmatpush3.bf16.msra.mxu1 %v2102_v13  ;;  %2104 = vmatprep.subr.bf16.mxu0 %v2566_v0  ;;  %p2469_p7 = scmp.ne.s32.totalorder %s3090_s22, %s2468_s19  ;;  %s2472_s14 = sshll.u32 %s2572_s13, 4  ;;  %s2473_s14 = int_to_ptr.vmem [resolvable:$false] %s2472_s14 }
 0x113   : > { %2032 = vmatprep.subr.mxu1 %v2568_v1  ;;  %p3211_p9 = scmp.ne.s32.totalorder %s3208_s4, 0  ;;  %s2474_s29 = scalar_lea.vmem %s2473_s14, 256 }
 0x114   : > { %2008 = vmatmul.mubr.msk.f32.vlgmr.msra.gmra.mrb[0].mxu0 %vm522_vm1, %v514_v16  ;;  %p2475_p3 = scmp.lt.s32.totalorder %s3090_s22, %s2473_s14  ;;  %p2476_p6 = scmp.lt.s32.totalorder %s2474_s29, %s2468_s19 }
 0x115   : > { %2106 = vmatpush3.bf16.msra.mxu0 %v2105_v17  ;;  %2019 = vmatmul.mubr.msk.f32.vlgmr.msra.gmra.mrb[0].mxu1 %vm522_vm1, %v515_v18  ;;  %s3088_s1 = scalar_lea.hbm %s3210_s16, %s1957_s18  ;;  %p2470_p11 = pnand %p2469_p7, %p3211_p9 }
 0x116   : > { %2107 = vmatprep.subr.bf16.mxu0 %v2566_v0  ;;  %2029 = vmatprep.mubr.msk.f32.mxu0 %vm2567_vm0, %v2568_v1  ;;  %p2477_p1 = por %p2476_p6, %p2475_p3 }
 0x117   : > { %2034 = vmatprep.mubr.msk.f32.mxu1 %vm2567_vm0, %v2568_v1  ;;  %p2471_p10 = pneg %p2470_p11 }
 0x119   : > { %2109 = vmatpush3.bf16.msra.mxu0 %v2108_v21  ;;  %p2478_p8 = pnand %p2477_p1, %p2471_p10 }
 0x11a   : > { %2042 = vmatprep.subr.mxu0 %v2568_v1 }
 0x11c   : > { %2030 = vmatmul.mubr.msk.f32.vlgmr.msra.gmra.mrb[2].mxu0 %vm522_vm1, %v516_v22 }
 0x11d   : > { %2044 = vmatprep.mubr.msk.f32.mxu0 %vm2567_vm0, %v2568_v1 }
 0x1e7   : > { %v2995_v23 = vpop.f32.mrb[0].mxu0 }
 0x1e8   : > { %v2009_v24 = vpop.f32.mrb[1].mxu0  ;;  %v669_v25 = vpop.f32.mrb[0].mxu1 }
 0x1e9   : > { %v2020_v26 = vpop.f32.mrb[1].mxu1  ;;  %917 = vrot.lane.b32.xlu0 %v669_v25, %s2569_s15  ;;  %2033 = vmatpush3.xpose.msk.msra.mxu1 %vm750_vm2, %v669_v25 }
 0x1ea   : > { %2037 = vmatprep.subr.mxu1 %v2568_v1  ;;  %v1397_v26 = vld [vmem:[#allocation14 + $0x10] sm:$0xff] }
 0x1ef   : > { %v3000_v27 = vpop.f32.mrb[2].mxu0 }
 0x1f0   : > { %915 = vrot.lane.b32.xlu0 %v3000_v27, %s2569_s15  ;;  %v2031_v28 = vpop.f32.mrb[3].mxu0  ;;  %2035 = vmatmul.mubr.msk.f32.vlgmr.msra.gmra.mrb[2].mxu1 %vm750_vm2, %v3000_v27 }
 0x1f1   : > { %2038 = vmatpush3.msra.mxu1 %v2995_v23  ;;  %2039 = vmatprep.mubr.msk.f32.mxu1 %vm2567_vm0, %v2568_v1 }
 0x1f2   : > { %2047 = vmatprep.subr.mxu1 %v2568_v1 }
 0x25b   : > { %v918_v29 = vpop.permute.xlu0 %917 }
 0x25c   : > { %2043 = vmatpush3.xpose.msk.msra.mxu0 %vm750_vm2, %v918_v29 }
 0x25d   : > { %2052 = vmatprep.subr.mxu0 %v2568_v1 }
 0x262   : > { %v916_v30 = vpop.permute.xlu0 %915 }
 0x263   : > { %2045 = vmatmul.mubr.msk.f32.vlgmr.msra.gmra.mrb[4].mxu0 %vm750_vm2, %v916_v30 }
 0x264   : > { %2054 = vmatprep.mubr.msk.f32.mxu0 %vm2567_vm0, %v2568_v1  ;;  %2053 = vmatpush3.msra.mxu0 %v1083_v55 }
 0x265   : > { %2062 = vmatprep.subr.mxu0 %v2568_v1 }
 0x2c3   : > { %v823_v32 = vpop.f32.mrb[2].mxu1 }
 0x2c4   : > { %v828_v33 = vsel %vm827_vm3, -1e+20, %v823_v32  ;;  %v2036_v34 = vpop.f32.mrb[3].mxu1 }
 0x2c5   : > { %v829_v35 = vmul.f32 0.17677669, %v828_v33 }
 0x2c7   : > { %v830_v36 = vsel %vm750_vm2, %v829_v35, -inf }
 0x2c8   : > { %831 = vmax.xlane.f32.xlu1 %v830_v36 }
 0x336   : > { %v989_v37 = vpop.f32.mrb[4].mxu0 }
 0x337   : > { %v993_v38 = vsel %vm827_vm3, -1e+20, %v989_v37  ;;  %v2046_v39 = vpop.f32.mrb[5].mxu0 }
 0x338   : > { %v994_v40 = vmul.f32 0.17677669, %v993_v38 }
 0x33a   : > { %v995_v41 = vsel %vm750_vm2, %v994_v40, -inf }
 0x33b   : > { %996 = vmax.xlane.f32.xlu1 %v995_v41 }
 0x355   : > { %v832_v42 = vpop.xlane.xlu1 %831 }
 0x356   : > { %v833_v43 = vsub.f32 %v829_v35, %v832_v42 }
 0x358   : > { %v834_v44 = vmul.f32 1.442695, %v833_v43 }
 0x35a   : > { %2220 = vpow2.f32 %v834_v44 }
 0x364   : > { %v2221_v45 = vpop.eup %2220 }
 0x365   : > { %v836_v46 = vsel %vm750_vm2, %v2221_v45, 0.0 }
 0x366   : > { %837 = vadd.xlane.f32.xlu0 %v836_v46 }
 0x37c   : > { %1321 = vrot.lane.b32.xlu0 %v2995_v23, %s2570_s27 }
 0x380   : > { %1474 = vrot.lane.b32.xlu0 %v669_v25, %s2571_s28 }
 0x3c8   : > { %v997_v47 = vpop.xlane.xlu1 %996 }
 0x3c9   : > { %v998_v48 = vsub.f32 %v994_v40, %v997_v47 }
 0x3cb   : > { %v999_v49 = vmul.f32 1.442695, %v998_v48  ;;  %v1955_v48 = vld [vmem:[%s3209_s30] ss:$0 sm:$0xff] }
 0x3cd   : > { %2222 = vpow2.f32 %v999_v49 }
 0x3d7   : > { %v2223_v50 = vpop.eup %2222 }
 0x3d8   : > { %v1001_v51 = vsel %vm750_vm2, %v2223_v50, 0.0 }
 0x3d9   : > { %1002 = vadd.xlane.f32.xlu1 %v1001_v51 }
 0x3ea   : > { %1007 = vrot.lane.b32.xlu1 %v2995_v23, %s2569_s15 }
 0x3ee   : > { %1232 = vrot.lane.b32.xlu1 %v669_v25, %s2570_s27 }
 0x3f2   : > { %1230 = vrot.lane.b32.xlu1 %v3000_v27, %s2570_s27 }
 0x3f3   : > { %v838_v52 = vpop.xlane.xlu0 %837 }
 0x3f4   : > { %2224 = vrcp.f32 %v838_v52 }
 0x3f7   : > { %v1322_v62 = vpop.permute.xlu0 %1321 }
 0x3fb   : > { %v1475_v20 = vpop.permute.xlu0 %1474 }
 0x3fe   : > { %v2225_v53 = vpop.eup %2224 }
 0x3ff   : > { %v840_v54 = vmul.f32 %v2225_v53, %v2221_v45 }
 0x401   : > { %2040 = vmatmul.mubr.msk.f32.vlgmr.msra.gmra.mrb[4].mxu1 %vm750_vm2, %v840_v54 }
 0x402   : > { %2049 = vmatprep.mubr.msk.f32.mxu1 %vm2567_vm0, %v2568_v1 }
 0x466   : > { %v1003_v56 = vpop.xlane.xlu1 %1002 }
 0x467   : > { %2226 = vrcp.f32 %v1003_v56 }
 0x46a   : > { %v1008_v57 = vpop.permute.xlu1 %1007 }
 0x46b   : > { %2048 = vmatpush3.msra.mxu1 %v1008_v57 }
 0x46c   : > { %2057 = vmatprep.subr.mxu1 %v2568_v1 }
 0x46e   : > { %v1233_v0 = vpop.permute.xlu1 %1232 }
 0x471   : > { %v2227_v58 = vpop.eup %2226 }
 0x472   : > { %v1005_v59 = vmul.f32 %v2227_v58, %v2223_v50  ;;  %v1231_v4 = vpop.permute.xlu1 %1230 }
 0x474   : > { %2050 = vmatmul.mubr.msk.f32.vlgmr.msra.gmra.mrb[6].mxu1 %vm750_vm2, %v1005_v59 }
 0x475   : > { %2058 = vmatpush3.msra.mxu1 %v914_v60  ;;  %2059 = vmatprep.mubr.msk.f32.mxu1 %vm2567_vm0, %v2568_v1 }
 0x476   : > { %2067 = vmatprep.subr.mxu1 %v2568_v1 }
 0x4d4   : > { %v910_v61 = vpop.f32.mrb[4].mxu1 }
 0x4d5   : > { %v2041_v63 = vpop.f32.mrb[5].mxu1  ;;  %2060 = vmatmul.mubr.msk.f32.vlgmr.msra.gmra.mrb[8].mxu1 %vm750_vm2, %v910_v61 }
 0x4d6   : > { %2068 = vmatpush3.msra.mxu1 %v1322_v62  ;;  %2069 = vmatprep.mubr.msk.f32.mxu1 %vm2567_vm0, %v2568_v1 }
 0x4d7   : > { %2077 = vmatprep.subr.mxu1 %v2568_v1 }
 0x547   : > { %v1079_v2 = vpop.f32.mrb[6].mxu1 }
 0x548   : > { %v2051_v3 = vpop.f32.mrb[7].mxu1  ;;  %2055 = vmatmul.mubr.msk.f32.vlgmr.msra.gmra.mrb[6].mxu0 %vm750_vm2, %v1079_v2 }
 0x549   : > { %2063 = vmatpush3.xpose.msk.msra.mxu0 %vm750_vm2, %v1233_v0  ;;  %2064 = vmatprep.mubr.msk.f32.mxu0 %vm2567_vm0, %v2568_v1 }
 0x54a   : > { %2072 = vmatprep.subr.mxu0 %v2568_v1 }
 0x54c   : > { %2065 = vmatmul.mubr.msk.f32.vlgmr.msra.gmra.mrb[8].mxu0 %vm750_vm2, %v1231_v4 }
 0x54d   : > { %2074 = vmatprep.mubr.msk.f32.mxu0 %vm2567_vm0, %v2568_v1  ;;  %2073 = vmatpush3.msra.mxu0 %v1397_v26 }
 0x54e   : > { %2082 = vmatprep.subr.mxu0 %v2568_v1 }
 0x5a8   : > { %v1226_v5 = vpop.f32.mrb[8].mxu1 }
 0x5a9   : > { %v2061_v6 = vpop.f32.mrb[9].mxu1 }
 0x61b   : > { %v1153_v7 = vpop.f32.mrb[6].mxu0 }
 0x61c   : > { %v1227_v8 = vadd.f32 %v1226_v5, %v1153_v7  ;;  %v2056_v9 = vpop.f32.mrb[7].mxu0 }
 0x61f   : > { %v1304_v10 = vpop.f32.mrb[8].mxu0 }
 0x620   : > { %v1308_v11 = vsel %vm827_vm3, -1e+20, %v1304_v10  ;;  %v2066_v12 = vpop.f32.mrb[9].mxu0 }
 0x621   : > { %v1309_v13 = vmul.f32 0.17677669, %v1308_v11 }
 0x623   : > { %v1310_v14 = vsel %vm750_vm2, %v1309_v13, -inf }
 0x624   : > { %1311 = vmax.xlane.f32.xlu1 %v1310_v14 }
 0x6b1   : > { %v1312_v15 = vpop.xlane.xlu1 %1311 }
 0x6b2   : > { %v1313_v16 = vsub.f32 %v1309_v13, %v1312_v15 }
 0x6b4   : > { %v1314_v17 = vmul.f32 1.442695, %v1313_v16 }
 0x6b6   : > { %2228 = vpow2.f32 %v1314_v17 }
 0x6c0   : > { %v2229_v18 = vpop.eup %2228 }
 0x6c1   : > { %v1316_v19 = vsel %vm750_vm2, %v2229_v18, 0.0 }
 0x6c2   : > { %1317 = vadd.xlane.f32.xlu0 %v1316_v19 }
 0x6d8   : > { %1472 = vrot.lane.b32.xlu0 %v3000_v27, %s2571_s28 }
 0x74f   : > { %v1318_v21 = vpop.xlane.xlu0 %1317 }
 0x750   : > { %2230 = vrcp.f32 %v1318_v21 }
 0x753   : > { %v1473_v25 = vpop.permute.xlu0 %1472 }
 0x75a   : > { %v2231_v22 = vpop.eup %2230 }
 0x75b   : > { %v1320_v24 = vmul.f32 %v2231_v22, %v2229_v18 }
 0x75d   : > { %2070 = vmatmul.mubr.msk.f32.vlgmr.msra.gmra.mrb[10].mxu1 %vm750_vm2, %v1320_v24 }
 0x75e   : > { %2078 = vmatpush3.xpose.msk.msra.mxu1 %vm750_vm2, %v1475_v20  ;;  %2079 = vmatprep.mubr.msk.f32.mxu1 %vm2567_vm0, %v2568_v1 }
 0x75f   : > { %2087 = vmatprep.subr.mxu1 %v2568_v1 }
 0x761   : > { %2080 = vmatmul.mubr.msk.f32.vlgmr.msra.gmra.mrb[12].mxu1 %vm750_vm2, %v1473_v25 }
 0x762   : > { %2089 = vmatprep.mubr.msk.f32.mxu1 %vm2567_vm0, %v2568_v1 }
 0x830   : > { %v1393_v27 = vpop.f32.mrb[10].mxu1 }
 0x831   : > { %v2071_v28 = vpop.f32.mrb[11].mxu1  ;;  %2075 = vmatmul.mubr.msk.f32.vlgmr.msra.gmra.mrb[10].mxu0 %vm750_vm2, %v1393_v27 }
 0x832   : > { %2084 = vmatprep.mubr.msk.f32.mxu0 %vm2567_vm0, %v2568_v1  ;;  %v1639_v1 = vld [vmem:[#allocation14 + $0x18] sm:$0xff] }
 0x833   : > { %2088 = vmatpush3.msra.mxu1 %v1639_v1 }
 0x834   : > { %v1546_v29 = vpop.f32.mrb[12].mxu1 }
 0x835   : > { %v1550_v30 = vsel %vm827_vm3, -1e+20, %v1546_v29  ;;  %v2081_v32 = vpop.f32.mrb[13].mxu1 }
 0x836   : > { %v1551_v33 = vmul.f32 0.17677669, %v1550_v30 }
 0x838   : > { %v1552_v34 = vsel %vm750_vm2, %v1551_v33, -inf }
 0x839   : > { %1553 = vmax.xlane.f32.xlu0 %v1552_v34 }
 0x8c6   : > { %v1554_v35 = vpop.xlane.xlu0 %1553 }
 0x8c7   : > { %v1555_v36 = vsub.f32 %v1551_v33, %v1554_v35 }
 0x8c9   : > { %v1556_v37 = vmul.f32 1.442695, %v1555_v36 }
 0x8cb   : > { %2232 = vpow2.f32 %v1556_v37 }
 0x8d5   : > { %v2233_v38 = vpop.eup %2232 }
 0x8d6   : > { %v1558_v39 = vsel %vm750_vm2, %v2233_v38, 0.0 }
 0x8d7   : > { %1559 = vadd.xlane.f32.xlu1 %v1558_v39 }
 0x8e8   : > { %1563 = vrot.lane.b32.xlu1 %v2995_v23, %s2571_s28 }
 0x904   : > { %v1467_v31 = vpop.f32.mrb[10].mxu0 }
 0x905   : > { %v1471_v40 = vadd.f32 %v1467_v31, %v1227_v8  ;;  %v2076_v41 = vpop.f32.mrb[11].mxu0 }
 0x964   : > { %v1560_v42 = vpop.xlane.xlu1 %1559 }
 0x965   : > { %2234 = vrcp.f32 %v1560_v42 }
 0x968   : > { %v1564_v43 = vpop.permute.xlu1 %1563 }
 0x969   : > { %2083 = vmatpush3.msra.mxu0 %v1564_v43 }
 0x96f   : > { %v2235_v44 = vpop.eup %2234 }
 0x970   : > { %v1562_v45 = vmul.f32 %v2235_v44, %v2233_v38 }
 0x972   : > { %2085 = vmatmul.mubr.msk.f32.vlgmr.msra.gmra.mrb[12].mxu0 %vm750_vm2, %v1562_v45 }
 0xa45   : > { %v1635_v46 = vpop.f32.mrb[12].mxu0 }
 0xa46   : > { %v2086_v47 = vpop.f32.mrb[13].mxu0  ;;  %2090 = vmatmul.mubr.msk.f32.vlgmr.msra.gmra.mrb[14].mxu1 %vm750_vm2, %v1635_v46 }
 0xb19   : > { %v1709_v23 = vpop.f32.mrb[14].mxu1 }
 0xb1a   : > { %v1713_v49 = vadd.f32 %v1709_v23, %v1471_v40  ;;  %v2091_v50 = vpop.f32.mrb[15].mxu1 }
 0xb1c   : > { %v1721_v51 = vadd.f32 %v1955_v48, %v1713_v49 }
 0xb1e   : > { %1722 = vst.msk [vmem:[%s513_s23] sm:$0xff] %vm522_vm1, %v1721_v51 }
 0xb1f   : > { %2481 = shalt.err (!%p2478_p8)
}
 0xb20   : > { %s2482_s5 = scalar_lea.hbm %s3088_s1, 128  ;;  %s2486_s8 = scalar_lea.hbm %s3210_s16, 256 }
 0xb21   : > { %p2483_p12 = scmp.ne.s32.totalorder %s3088_s1, %s2482_s5  ;;  %p2487_p4 = scmp.lt.u32.totalorder %s3088_s1, %s3210_s16 }
 0xb22   : > { %p2488_p0 = scmp.lt.u32.totalorder %s2486_s8, %s2482_s5  ;;  %p2490_p7 = scmp.lt.u32.totalorder %s2482_s5, %s3088_s1 }
 0xb23   : > { %p2484_p5 = pnand %p2483_p12, %p3211_p9 }
 0xb24   : > { %p2489_p13 = por %p2488_p0, %p2487_p4 }
 0xb25   : > { %p2485_p2 = pneg %p2484_p5 }
 0xb26   : > { %p2491_p11 = por %p2490_p7, %p2489_p13 }
 0xb28   : > { %p2492_p10 = pnand %p2491_p11, %p2485_p2 }
 0xb2a   : > { %2495 = shalt.err (!%p2492_p10)
}
 0xb2b   : > { %2134 = dma.vmem_to_hbm [thread:$0]  (%p3211_p9), %s3090_s22, 128, %s3088_s1, %s1724_s17  }
 0xb2c PF: > { %s3212_s28 = sld [smem:[#allocation24_spill]]  ;;  %s3213_s20 = sld [smem:[#allocation25_spill]] }
 0xb2d   : > { %p3215_p6 = scmp.ge.s32.totalorder %s2554_s12, 2 }
 0xb32   : > { %s1749_s26 = sand.u32 1, %s3212_s28   ;;  %p3214_p3 = scmp.ne.s32.totalorder %s3213_s20, 0 }
 0xb33   : > { %s1750_s30 = scalar_lea.sflag [#allocation4], %s1749_s26 }
 0xb34   : > { %p2163_p1 = pnand %p3215_p6, %p3214_p3 }
 0xb36   : > { %2537 = dma.done.wait (!%p2163_p1), %s1750_s30, 128  }
 0xb37   : > { %2539 = vsyncadd (!%p2163_p1), %s1750_s30, 4294967168  ;;  %s3216_s12 = sld [smem:[#allocation26_spill]]  ;;  %s3217_s18 = sld [smem:[#allocation28_spill]] }
 0xb38   : > { %s3218_s30 = smov %s2546_s10  ;;  %s3219_s10 = smov %s2550_s11 }
 0xb3d   : > { %p30_p8 = scmp.ge.s32.totalorder %s3216_s12, 4   ;;  %s3220_s11 = smov %s3217_s18 }
 0xb3f   :  { %32 = sbr.rel (!%p30_p8) target bundleno = 17 (0x11), region = 154 }
 0xb46   :  { %1755 = vsyncpa [#allocation3], 1 }
 0xb47   :  { %1757 = vsyncpa [#allocation3 + $0x1], 1 }
 0xb48   :  { %1758 = vsyncpa [#allocation6], 1 }
 0xb49   :  { %1760 = vsyncpa [#allocation6 + $0x1], 1 }
 0xb4a   :  { %1761 = vsyncpa [#allocation9], 1 }
 0xb4b   :  { %1763 = vsyncpa [#allocation9 + $0x1], 1 }
 0xb4c   :  { %1764 = vsyncpa [#allocation12], 1 }
 0xb4d   :  { %1765 = vsyncpa [#allocation15], 1 }
 0xb4e   :  { %1766 = vsyncpa [#allocation4], 1 }
 0xb4f   :  { %1768 = vsyncpa [#allocation4 + $0x1], 1 }

</bundles_post_ra>
